<compile_context>
chip_gen: v7x
topology: tpu7x:2x2x1
jax: 0.10.0
libtpu: 0.0.40
codegen_flags: <defaults>
</compile_context>

<pallas_src>
import functools
import math

import jax
import jax.numpy as jnp
from jax.experimental import pallas as pl
from jax.experimental.pallas import tpu as pltpu

EPSILON = 1e-06
LOG_STD_MAX = 2.0
LOG_STD_MIN = -20.0
NN_LAYER_1 = 200
NN_LAYER_2 = 100

# Lane-aligned internal sizes.
H1P = 256          # NN_LAYER_1 padded: one full 256-wide MXU tile (v6e/v7x), 2x128 (v5e)
H2P = 128          # NN_LAYER_2 padded to the 128-lane granule
OUT_LANES = 128    # packed output lanes: [0:A) action, lane A log_prob
HEAD = 2 * OUT_LANES  # fused head width: mean half [0:128), log_std half [128:256)

_HALF_LOG_2PI = 0.5 * math.log(2.0 * math.pi)


def _sac_policy_kernel(noise_ref,                  # SMEM (1, 1) scalar N(0,1) sample
                       state_ref,                  # VMEM (BM, D)
                       w1_ref, b1_ref,             # (D, H1P), (1, H1P)
                       w2_ref, b2_ref,             # (H1P, H2P), (1, H2P)
                       wh_ref, bh_ref,             # fused head (H2P, 256), (1, 256)
                       out_ref,                    # out (BM, 128) packed
                       *, num_actions):
    x = state_ref[...]

    # linear1 + relu  (padded lanes: 0 weight, 0 bias -> relu(0) = 0)
    h1 = jnp.dot(x, w1_ref[...], preferred_element_type=jnp.float32) + b1_ref[...]
    h1 = jnp.maximum(h1, 0.0)

    # linear2 + relu
    h2 = jnp.dot(h1, w2_ref[...], preferred_element_type=jnp.float32) + b2_ref[...]
    h2 = jnp.maximum(h2, 0.0)

    # fused mean|log_std head: a single MXU pass, then split at the 128-lane boundary.
    head = jnp.dot(h2, wh_ref[...], preferred_element_type=jnp.float32) + bh_ref[...]
    mean = head[:, :OUT_LANES]                               # lanes [0:A) valid
    log_std = jnp.clip(head[:, OUT_LANES:], LOG_STD_MIN, LOG_STD_MAX)
    std = jnp.exp(log_std)

    # Reparameterized sample with a single scalar epsilon (torch's 0-dim
    # Normal(0,1).sample() broadcasts over batch and action dims).
    eps = noise_ref[0, 0]
    z = mean + std * eps
    action = jnp.tanh(z)

    # log N(z; mean, std) = -0.5*((z-mean)/std)^2 - log(std) - 0.5*log(2*pi),
    # and (z - mean)/std == eps exactly.
    log_prob = (-0.5 * eps * eps) - log_std - _HALF_LOG_2PI \
               - jnp.log(1.0 - action * action + EPSILON)

    bm = out_ref.shape[0]
    col = jax.lax.broadcasted_iota(jnp.int32, (bm, OUT_LANES), 1)
    valid = col < num_actions                                 # mask padded head lanes
    logp = jnp.sum(jnp.where(valid, log_prob, 0.0), axis=-1, keepdims=True)   # (BM, 1)

    # Pack into one lane-dense slab: lanes [0:A) = action, lane A = log_prob, rest 0.
    out_ref[...] = jnp.where(valid, action,
                             jnp.where(col == num_actions, logp, 0.0))


def sac_policy_forward(state, params, noise, *, num_actions):
    """state: (B, num_inputs) f32; params: padded/fused weights (see pad_and_fuse_params);
    noise: scalar N(0,1) sample. Returns (action (B, A), log_prob (B, 1))."""
    B, D = state.shape

    # Batch grid: shard large batches in 128-row blocks across TensorCores.
    BM = 128 if (B % 128 == 0 and B > 128) else B
    grid = (B // BM,)

    noise_arr = jnp.asarray(noise, jnp.float32).reshape(1, 1)

    smem_full = pl.BlockSpec(memory_space=pltpu.MemorySpace.SMEM)
    const2d = lambda shape: pl.BlockSpec(shape, lambda i: (0, 0))   # weights: resident block

    flops = 2 * B * (D * H1P + H1P * H2P + H2P * HEAD)
    transcendentals = 3 * B * OUT_LANES                       # exp + tanh + log
    bytes_accessed = 4 * (B * D + D * H1P + H1P + H1P * H2P + H2P
                          + H2P * HEAD + HEAD + B * OUT_LANES)

    packed = pl.pallas_call(
        functools.partial(_sac_policy_kernel, num_actions=num_actions),
        out_shape=jax.ShapeDtypeStruct((B, OUT_LANES), jnp.float32),
        grid=grid,
        in_specs=[
            smem_full,                                   # noise scalar
            pl.BlockSpec((BM, D), lambda i: (i, 0)),     # state, tiled over batch
            const2d((D, H1P)), const2d((1, H1P)),        # w1, b1
            const2d((H1P, H2P)), const2d((1, H2P)),      # w2, b2
            const2d((H2P, HEAD)), const2d((1, HEAD)),    # fused head weight, bias
        ],
        out_specs=pl.BlockSpec((BM, OUT_LANES), lambda i: (i, 0)),
        compiler_params=pltpu.CompilerParams(dimension_semantics=("parallel",)),
        cost_estimate=pl.CostEstimate(flops=flops,
                                      transcendentals=transcendentals,
                                      bytes_accessed=bytes_accessed),
    )(noise_arr, state,
      params["w1"], params["b1"],
      params["w2"], params["b2"],
      params["wh"], params["bh"])

    action = packed[:, :num_actions]
    log_prob = packed[:, num_actions:num_actions + 1]
    return action, log_prob


def init_params(key, num_inputs, num_actions):
    """PyTorch nn.Linear-style init: U(-1/sqrt(fan_in), 1/sqrt(fan_in)).
    Weights stored transposed, i.e. (in, out)."""
    def linear(k, fan_in, fan_out):
        kw, kb = jax.random.split(k)
        bound = 1.0 / math.sqrt(fan_in)
        w = jax.random.uniform(kw, (fan_in, fan_out), jnp.float32, -bound, bound)
        b = jax.random.uniform(kb, (1, fan_out), jnp.float32, -bound, bound)
        return w, b

    k1, k2, k3, k4 = jax.random.split(key, 4)
    w1, b1 = linear(k1, num_inputs, NN_LAYER_1)
    w2, b2 = linear(k2, NN_LAYER_1, NN_LAYER_2)
    wm, bm = linear(k3, NN_LAYER_2, num_actions)
    ws, bs = linear(k4, NN_LAYER_2, num_actions)
    return {"w1": w1, "b1": b1, "w2": w2, "b2": b2,
            "wm": wm, "bm": bm, "ws": ws, "bs": bs}


def pad_and_fuse_params(raw, num_actions):
    """One-time lane-alignment + head fusion (do this OUTSIDE the rollout loop so the
    padded weights stay resident across forward calls). Zero padding is exact."""
    w1 = jnp.zeros((raw["w1"].shape[0], H1P), jnp.float32).at[:, :NN_LAYER_1].set(raw["w1"])
    b1 = jnp.zeros((1, H1P), jnp.float32).at[:, :NN_LAYER_1].set(raw["b1"])
    w2 = jnp.zeros((H1P, H2P), jnp.float32).at[:NN_LAYER_1, :NN_LAYER_2].set(raw["w2"])
    b2 = jnp.zeros((1, H2P), jnp.float32).at[:, :NN_LAYER_2].set(raw["b2"])
    wh = (jnp.zeros((H2P, HEAD), jnp.float32)
          .at[:NN_LAYER_2, :num_actions].set(raw["wm"])
          .at[:NN_LAYER_2, OUT_LANES:OUT_LANES + num_actions].set(raw["ws"]))
    bh = (jnp.zeros((1, HEAD), jnp.float32)
          .at[:, :num_actions].set(raw["bm"])
          .at[:, OUT_LANES:OUT_LANES + num_actions].set(raw["bs"]))
    return {"w1": w1, "b1": b1, "w2": w2, "b2": b2, "wh": wh, "bh": bh}


if __name__ == "__main__":
    key = jax.random.PRNGKey(0)
    k_param, k_state, k_noise = jax.random.split(key, 3)

    batch = 4
    num_inputs = 16
    num_actions = 8

    raw_params = init_params(k_param, num_inputs, num_actions)
    params = pad_and_fuse_params(raw_params, num_actions)   # done once; reused across calls
    state = jax.random.normal(k_state, (batch, num_inputs), jnp.float32)
    # TODO(synk): torch.distributions.Normal(0,1).sample() is drawn host-side and
    # passed in as a scalar (no in-kernel RNG needed for a single 0-dim sample).
    noise = jax.random.normal(k_noise, ())

    fwd = jax.jit(functools.partial(sac_policy_forward, num_actions=num_actions))
    action, log_prob = fwd(state, params, noise)
    jax.block_until_ready((action, log_prob))

    assert action.shape == (batch, num_actions)
    assert log_prob.shape == (batch, 1)
    assert bool(jnp.all(jnp.isfinite(action))) and bool(jnp.all(jnp.isfinite(log_prob)))
    print("KERNEL_OK")
</pallas_src>

<mosaic_0001>
module attributes {stable_mosaic.version = 11 : i64} {
  func.func @_sac_policy_kernel(%arg0: i32, %arg1: memref<1x1xf32, #tpu.memory_space<smem>>, %arg2: memref<4x16xf32, #tpu.memory_space<vmem>>, %arg3: memref<16x256xf32, #tpu.memory_space<vmem>>, %arg4: memref<1x256xf32, #tpu.memory_space<vmem>>, %arg5: memref<256x128xf32, #tpu.memory_space<vmem>>, %arg6: memref<1x128xf32, #tpu.memory_space<vmem>>, %arg7: memref<128x256xf32, #tpu.memory_space<vmem>>, %arg8: memref<1x256xf32, #tpu.memory_space<vmem>>, %arg9: memref<4x128xf32, #tpu.memory_space<vmem>>) attributes {dimension_semantics = [#tpu.dimension_semantics<parallel>], iteration_bounds = array<i64: 1>, scalar_prefetch = 0 : i64, scratch_operands = 0 : i64, tpu.core_type = #tpu.core_type<tc>, window_params = [{transform_indices = @transform_0, window_bounds = array<i64: 1, 1>}, {transform_indices = @transform_1, window_bounds = array<i64: 4, 16>}, {pipeline_mode = #tpu.pipeline_mode<synchronous>, transform_indices = @transform_2, window_bounds = array<i64: 16, 256>}, {pipeline_mode = #tpu.pipeline_mode<synchronous>, transform_indices = @transform_3, window_bounds = array<i64: 1, 256>}, {pipeline_mode = #tpu.pipeline_mode<synchronous>, transform_indices = @transform_4, window_bounds = array<i64: 256, 128>}, {pipeline_mode = #tpu.pipeline_mode<synchronous>, transform_indices = @transform_5, window_bounds = array<i64: 1, 128>}, {pipeline_mode = #tpu.pipeline_mode<synchronous>, transform_indices = @transform_6, window_bounds = array<i64: 128, 256>}, {pipeline_mode = #tpu.pipeline_mode<synchronous>, transform_indices = @transform_7, window_bounds = array<i64: 1, 256>}, {transform_indices = @transform_8, window_bounds = array<i64: 4, 128>}]} {
    %c0 = arith.constant 0 : index
    %c0_0 = arith.constant 0 : index
    %0 = vector.load %arg2[%c0, %c0_0] : memref<4x16xf32, #tpu.memory_space<vmem>>, vector<4x16xf32>
    %c0_1 = arith.constant 0 : index
    %c0_2 = arith.constant 0 : index
    %1 = vector.load %arg3[%c0_1, %c0_2] : memref<16x256xf32, #tpu.memory_space<vmem>>, vector<16x256xf32>
    %cst = arith.constant dense<0.000000e+00> : vector<4x256xf32>
    %2 = tpu.matmul %0, %1, %cst {dimension_numbers = #tpu.dot_dimension_numbers<[1], [0], [0], [1], [0, 0, 1, 1], [], []>} : vector<4x16xf32>, vector<16x256xf32>, vector<4x256xf32> -> vector<4x256xf32>
    %c0_3 = arith.constant 0 : index
    %c0_4 = arith.constant 0 : index
    %3 = vector.load %arg4[%c0_3, %c0_4] : memref<1x256xf32, #tpu.memory_space<vmem>>, vector<1x256xf32>
    %4 = vector.broadcast %3 : vector<1x256xf32> to vector<4x256xf32>
    %5 = arith.addf %2, %4 : vector<4x256xf32>
    %cst_5 = arith.constant 0.000000e+00 : f32
    %6 = vector.broadcast %cst_5 : f32 to vector<4x256xf32>
    %7 = arith.maximumf %5, %6 : vector<4x256xf32>
    %c0_6 = arith.constant 0 : index
    %c0_7 = arith.constant 0 : index
    %8 = vector.load %arg5[%c0_6, %c0_7] : memref<256x128xf32, #tpu.memory_space<vmem>>, vector<256x128xf32>
    %cst_8 = arith.constant dense<0.000000e+00> : vector<4x128xf32>
    %9 = tpu.matmul %7, %8, %cst_8 {dimension_numbers = #tpu.dot_dimension_numbers<[1], [0], [0], [1], [0, 0, 1, 1], [], []>} : vector<4x256xf32>, vector<256x128xf32>, vector<4x128xf32> -> vector<4x128xf32>
    %c0_9 = arith.constant 0 : index
    %c0_10 = arith.constant 0 : index
    %10 = vector.load %arg6[%c0_9, %c0_10] : memref<1x128xf32, #tpu.memory_space<vmem>>, vector<1x128xf32>
    %11 = vector.broadcast %10 : vector<1x128xf32> to vector<4x128xf32>
    %12 = arith.addf %9, %11 : vector<4x128xf32>
    %cst_11 = arith.constant 0.000000e+00 : f32
    %13 = vector.broadcast %cst_11 : f32 to vector<4x128xf32>
    %14 = arith.maximumf %12, %13 : vector<4x128xf32>
    %c0_12 = arith.constant 0 : index
    %c0_13 = arith.constant 0 : index
    %15 = vector.load %arg7[%c0_12, %c0_13] : memref<128x256xf32, #tpu.memory_space<vmem>>, vector<128x256xf32>
    %cst_14 = arith.constant dense<0.000000e+00> : vector<4x256xf32>
    %16 = tpu.matmul %14, %15, %cst_14 {dimension_numbers = #tpu.dot_dimension_numbers<[1], [0], [0], [1], [0, 0, 1, 1], [], []>} : vector<4x128xf32>, vector<128x256xf32>, vector<4x256xf32> -> vector<4x256xf32>
    %c0_15 = arith.constant 0 : index
    %c0_16 = arith.constant 0 : index
    %17 = vector.load %arg8[%c0_15, %c0_16] : memref<1x256xf32, #tpu.memory_space<vmem>>, vector<1x256xf32>
    %18 = vector.broadcast %17 : vector<1x256xf32> to vector<4x256xf32>
    %19 = arith.addf %16, %18 : vector<4x256xf32>
    %20 = vector.extract_strided_slice %19 {offsets = [0, 0], sizes = [4, 128], strides = [1, 1]} : vector<4x256xf32> to vector<4x128xf32>
    %21 = vector.extract_strided_slice %19 {offsets = [0, 128], sizes = [4, 128], strides = [1, 1]} : vector<4x256xf32> to vector<4x128xf32>
    %cst_17 = arith.constant -2.000000e+01 : f32
    %cst_18 = arith.constant 2.000000e+00 : f32
    %22 = vector.broadcast %cst_17 : f32 to vector<4x128xf32>
    %23 = arith.maximumf %22, %21 : vector<4x128xf32>
    %24 = vector.broadcast %cst_18 : f32 to vector<4x128xf32>
    %25 = arith.minimumf %24, %23 : vector<4x128xf32>
    %26 = math.exp %25 : vector<4x128xf32>
    %c0_19 = arith.constant 0 : index
    %c0_20 = arith.constant 0 : index
    %27 = memref.load %arg1[%c0_19, %c0_20] : memref<1x1xf32, #tpu.memory_space<smem>>
    %28 = vector.broadcast %27 : f32 to vector<4x128xf32>
    %29 = arith.mulf %26, %28 : vector<4x128xf32>
    %30 = arith.addf %20, %29 : vector<4x128xf32>
    %31 = math.tanh %30 : vector<4x128xf32>
    %cst_21 = arith.constant -5.000000e-01 : f32
    %32 = arith.mulf %cst_21, %27 : f32
    %33 = arith.mulf %32, %27 : f32
    %34 = vector.broadcast %33 : f32 to vector<4x128xf32>
    %35 = arith.subf %34, %25 : vector<4x128xf32>
    %cst_22 = arith.constant 0.918938517 : f32
    %36 = vector.broadcast %cst_22 : f32 to vector<4x128xf32>
    %37 = arith.subf %35, %36 : vector<4x128xf32>
    %38 = arith.mulf %31, %31 : vector<4x128xf32>
    %cst_23 = arith.constant 1.000000e+00 : f32
    %39 = vector.broadcast %cst_23 : f32 to vector<4x128xf32>
    %40 = arith.subf %39, %38 : vector<4x128xf32>
    %cst_24 = arith.constant 9.99999997E-7 : f32
    %41 = vector.broadcast %cst_24 : f32 to vector<4x128xf32>
    %42 = arith.addf %40, %41 : vector<4x128xf32>
    %43 = math.log %42 : vector<4x128xf32>
    %44 = arith.subf %37, %43 : vector<4x128xf32>
    %45 = tpu.iota {dimensions = array<i32: 1>} : vector<4x128xi32>
    %c8_i32 = arith.constant 8 : i32
    %46 = vector.broadcast %c8_i32 : i32 to vector<4x128xi32>
    %47 = arith.cmpi slt, %45, %46 : vector<4x128xi32>
    %cst_25 = arith.constant 0.000000e+00 : f32
    %48 = vector.broadcast %cst_25 : f32 to vector<4x128xf32>
    %49 = arith.select %47, %44, %48 : vector<4x128xi1>, vector<4x128xf32>
    %cst_26 = arith.constant dense<0.000000e+00> : vector<4xf32>
    %50 = vector.multi_reduction <add>, %49, %cst_26 [1] : vector<4x128xf32> to vector<4xf32>
    %51 = vector.shape_cast %50 : vector<4xf32> to vector<4x1xf32>
    %c8_i32_27 = arith.constant 8 : i32
    %52 = vector.broadcast %c8_i32_27 : i32 to vector<4x128xi32>
    %53 = arith.cmpi eq, %45, %52 : vector<4x128xi32>
    %cst_28 = arith.constant 0.000000e+00 : f32
    %54 = vector.shape_cast %51 : vector<4x1xf32> to vector<4x1xf32>
    %55 = vector.broadcast %54 : vector<4x1xf32> to vector<4x128xf32>
    %56 = vector.broadcast %cst_28 : f32 to vector<4x128xf32>
    %57 = arith.select %53, %55, %56 : vector<4x128xi1>, vector<4x128xf32>
    %58 = arith.select %47, %31, %57 : vector<4x128xi1>, vector<4x128xf32>
    %c0_29 = arith.constant 0 : index
    %c0_30 = arith.constant 0 : index
    %59 = vector.load %arg9[%c0_29, %c0_30] : memref<4x128xf32, #tpu.memory_space<vmem>>, vector<4x128xf32>
    tpu.vector_store %arg9[%c0_29, %c0_30], %58 {strides = array<i32>} : memref<4x128xf32, #tpu.memory_space<vmem>>, vector<4x128xf32>,
    return
  }
  func.func @transform_0(%arg0: i32) -> (i32, i32) {
    %c0_i32 = arith.constant 0 : i32
    %c0_i32_0 = arith.constant 0 : i32
    %c0_i32_1 = arith.constant 0 : i32
    return %c0_i32, %c0_i32_0 : i32, i32
  }
  func.func @transform_1(%arg0: i32) -> (i32, i32) {
    %c0_i32 = arith.constant 0 : i32
    %c0_i32_0 = arith.constant 0 : i32
    return %arg0, %c0_i32 : i32, i32
  }
  func.func @transform_2(%arg0: i32) -> (i32, i32) {
    %c0_i32 = arith.constant 0 : i32
    %c0_i32_0 = arith.constant 0 : i32
    %c0_i32_1 = arith.constant 0 : i32
    return %c0_i32, %c0_i32_0 : i32, i32
  }
  func.func @transform_3(%arg0: i32) -> (i32, i32) {
    %c0_i32 = arith.constant 0 : i32
    %c0_i32_0 = arith.constant 0 : i32
    %c0_i32_1 = arith.constant 0 : i32
    return %c0_i32, %c0_i32_0 : i32, i32
  }
  func.func @transform_4(%arg0: i32) -> (i32, i32) {
    %c0_i32 = arith.constant 0 : i32
    %c0_i32_0 = arith.constant 0 : i32
    %c0_i32_1 = arith.constant 0 : i32
    return %c0_i32, %c0_i32_0 : i32, i32
  }
  func.func @transform_5(%arg0: i32) -> (i32, i32) {
    %c0_i32 = arith.constant 0 : i32
    %c0_i32_0 = arith.constant 0 : i32
    %c0_i32_1 = arith.constant 0 : i32
    return %c0_i32, %c0_i32_0 : i32, i32
  }
  func.func @transform_6(%arg0: i32) -> (i32, i32) {
    %c0_i32 = arith.constant 0 : i32
    %c0_i32_0 = arith.constant 0 : i32
    %c0_i32_1 = arith.constant 0 : i32
    return %c0_i32, %c0_i32_0 : i32, i32
  }
  func.func @transform_7(%arg0: i32) -> (i32, i32) {
    %c0_i32 = arith.constant 0 : i32
    %c0_i32_0 = arith.constant 0 : i32
    %c0_i32_1 = arith.constant 0 : i32
    return %c0_i32, %c0_i32_0 : i32, i32
  }
  func.func @transform_8(%arg0: i32) -> (i32, i32) {
    %c0_i32 = arith.constant 0 : i32
    %c0_i32_0 = arith.constant 0 : i32
    return %arg0, %c0_i32 : i32, i32
  }
}

</mosaic_0001>

<bundles_post_ra>
// kernel: sac_policy_forward.1
= control target key start
LH: loop header
LB: loop body
LE: loop exit
PB: predicated region body
PF: predicated region fallthrough
CT: control target
= control target key end

     0   :  { %14 = vsyncpa [#allocation4], 0  ;;  %s733_s0 = inlined_call_operand.<no memory space> [shape: f32[1,1], index: 0, kind: input, shape index: {}]   ;;  %s734_s1 = inlined_call_operand.vmem [shape: f32[4,16], index: 1, kind: input, shape index: {}]   ;;  %s735_s2 = inlined_call_operand.hbm [shape: f32[16,256], index: 2, kind: input, shape index: {}]   ;;  %s736_s3 = inlined_call_operand.vmem [shape: f32[1,256], index: 3, kind: input, shape index: {}]   ;;  %s737_s4 = inlined_call_operand.hbm [shape: f32[256,128], index: 4, kind: input, shape index: {}]   ;;  %s738_s5 = inlined_call_operand.vmem [shape: f32[1,128], index: 5, kind: input, shape index: {}]   ;;  %s739_s6 = inlined_call_operand.hbm [shape: f32[128,256], index: 6, kind: input, shape index: {}]   ;;  %s740_s7 = inlined_call_operand.vmem [shape: f32[1,256], index: 7, kind: input, shape index: {}]   ;;  %s741_s8 = inlined_call_operand.vmem [shape: f32[4,128], index: 8, kind: output, shape index: {}]  }
   0x1   :  { %15 = vsyncpa [#allocation6], 0  ;;  %s618_s27 = smov [#allocation5]   ;;  %s548_s9 = scalar_lea.hbm %s737_s4, 4096 }
   0x2   :  { %s39_s28 = sshll.u32 %s618_s27, 4  ;;  %p549_p0 = scmp.ne.s32.totalorder %s737_s4, %s548_s9  ;;  %s40_s28 = int_to_ptr.vmem [resolvable:$true] %s39_s28 }
   0x3   :  { %p552_p1 = scmp.lt.u32.totalorder %s548_s9, %s737_s4 }
   0x5   :  { %p554_p2 = pnand %p552_p1, %p549_p0 }
   0x7   :  { %557 = shalt.err (!%p554_p2)
}
   0x8   :  { %s558_s14 = scalar_lea.vmem %s40_s28, 4096  ;;  %p563_p4 = scmp.lt.s32.totalorder %s40_s28, %s40_s28 }
   0x9   :  { %p559_p3 = scmp.ne.s32.totalorder %s40_s28, %s558_s14  ;;  %p564_p5 = scmp.lt.s32.totalorder %s558_s14, %s558_s14 }
   0xb   :  { %p565_p6 = por %p564_p5, %p563_p4 }
   0xd   :  { %p566_p7 = pnand %p565_p6, %p559_p3 }
   0xf   :  { %569 = shalt.err (!%p566_p7)
}
  0x10   :  { %s619_s15 = smov 128   ;;  %s620_s16 = smov 8  }
  0x11   :  { %45 = dma.hbm_to_vmem [thread:$0]  %s737_s4, 4096, %s40_s28, [#allocation6], %s619_s15, %s619_s15, %s620_s16  }
  0x12   :  { %s621_s19 = smov [#allocation3]   ;;  %s570_s23 = scalar_lea.hbm %s735_s2, 512 }
  0x13   :  { %s25_s20 = sshll.u32 %s621_s19, 4  ;;  %p571_p8 = scmp.ne.s32.totalorder %s735_s2, %s570_s23  ;;  %s26_s20 = int_to_ptr.vmem [resolvable:$true] %s25_s20 }
  0x14   :  { %p574_p9 = scmp.lt.u32.totalorder %s570_s23, %s735_s2 }
  0x16   :  { %p576_p10 = pnand %p574_p9, %p571_p8 }
  0x18   :  { %579 = shalt.err (!%p576_p10)
}
  0x19   :  { %s580_s29 = scalar_lea.vmem %s26_s20, 512  ;;  %p585_p12 = scmp.lt.s32.totalorder %s26_s20, %s26_s20 }
  0x1a   :  { %p581_p11 = scmp.ne.s32.totalorder %s26_s20, %s580_s29  ;;  %p586_p13 = scmp.lt.s32.totalorder %s580_s29, %s580_s29 }
  0x1c   :  { %p587_p0 = por %p586_p13, %p585_p12 }
  0x1e   :  { %p588_p1 = pnand %p587_p0, %p581_p11 }
  0x20   :  { %591 = shalt.err (!%p588_p1)
}
  0x21   :  { %s622_s4 = smov 256   ;;  %s623_s28 = smov 16  }
  0x22   :  { %31 = dma.hbm_to_vmem [thread:$0]  %s735_s2, 512, %s26_s20, [#allocation4], %s622_s4, %s622_s4, %s623_s28  }
  0x23   :  { %s624_s10 = smov [#allocation7]   ;;  %s592_s14 = scalar_lea.hbm %s739_s6, 4096 }
  0x24   :  { %s53_s11 = sshll.u32 %s624_s10, 4  ;;  %p593_p2 = scmp.ne.s32.totalorder %s739_s6, %s592_s14  ;;  %s54_s11 = int_to_ptr.vmem [resolvable:$true] %s53_s11 }
  0x25   :  { %p596_p3 = scmp.lt.u32.totalorder %s592_s14, %s739_s6 }
  0x27   :  { %p598_p4 = pnand %p596_p3, %p593_p2 }
  0x29   :  { %601 = shalt.err (!%p598_p4)
}
  0x2a   :  { %s602_s19 = scalar_lea.vmem %s54_s11, 4096  ;;  %p607_p6 = scmp.lt.s32.totalorder %s54_s11, %s54_s11 }
  0x2b   :  { %p603_p5 = scmp.ne.s32.totalorder %s54_s11, %s602_s19  ;;  %p608_p7 = scmp.lt.s32.totalorder %s602_s19, %s602_s19 }
  0x2d   :  { %p609_p8 = por %p608_p7, %p607_p6 }
  0x2f   :  { %p610_p9 = pnand %p609_p8, %p603_p5 }
  0x31   :  { %613 = shalt.err (!%p610_p9)
}
  0x32   :  { %59 = dma.hbm_to_vmem [thread:$0]  %s739_s6, 4096, %s54_s11, [#allocation6], %s622_s4, %s622_s4, %s623_s28  }
  0x33   :  { %614 = dma.done.wait [#allocation4], 512  }
  0x34   :  { %615 = vsyncadd [#allocation4], 4294966784 }
  0x35   :  { %616 = dma.done.wait [#allocation6], 8192  }
  0x36   :  { %617 = vsyncadd [#allocation6], 4294959104  ;;  %v625_v0 = vmov 0.0   ;;  %v73_v1 = vld [vmem:[#allocation3 + $0x8] sm:$0xff]  ;;  %v75_v2 = vld [vmem:[#allocation3 + $0x18] sm:$0xff]  ;;  %vm88_vm0 = vcmask 130048  }
  0x37   :  { %156 = vmatprep.mubr.f32.mxu0 %v625_v0  ;;  %v72_v3 = vld [vmem:[#allocation3] sm:$0xff]  ;;  %v466_v4 = vpack.c.bf16 %v75_v2, %v73_v1  ;;  %v74_v5 = vld [vmem:[#allocation3 + $0x10] sm:$0xff]  ;;  %v182_v9 = vld [vmem:[#allocation5 + $0x88] sm:$0xff]  ;;  %s399_s29 = smul.f32 -0.5, %s733_s0  ;;  %vm414_vm2 = vcmask 1043456  }
  0x38   :  { %v181_v6 = vld [vmem:[#allocation5 + $0x80] sm:$0xff]  ;;  %v468_v7 = vpack.c.bf16 %v74_v5, %v72_v3  ;;  %v166_v11 = vld [vmem:[#allocation5 + $0x8] sm:$0xff]  ;;  %v183_v14 = vld [vmem:[#allocation5 + $0x90] sm:$0xff] }
  0x39   :  { %v71_v8 = vld [vmem:[%s734_s1] sm:$0xf]  ;;  %467 = vmatprep.subr.bf16.mxu0 %v466_v4  ;;  %v470_v12 = vpack.c.bf16 %v182_v9, %v181_v6  ;;  %v184_v15 = vld [vmem:[#allocation5 + $0x98] sm:$0xff]  ;;  %v167_v16 = vld [vmem:[#allocation5 + $0x10] sm:$0xff]  ;;  %s400_s30 = smul.f32 %s399_s29, %s733_s0 }
  0x3a   :  { %v165_v10 = vld [vmem:[#allocation5] sm:$0xff]  ;;  %469 = vmatpush1.bf16.msra.mxu0 %v468_v7  ;;  %v474_v17 = vpack.c.bf16 %v184_v15, %v183_v14  ;;  %v168_v18 = vld [vmem:[#allocation5 + $0x18] sm:$0xff]  ;;  %v186_v20 = vld [vmem:[#allocation5 + $0xa8] sm:$0xff] }
  0x3b   :  { %v472_v13 = vpack.c.bf16 %v166_v11, %v165_v10  ;;  %v185_v19 = vld [vmem:[#allocation5 + $0xa0] sm:$0xff]  ;;  %471 = vmatprep.subr.bf16.mxu1 %v470_v12  ;;  %v476_v21 = vpack.c.bf16 %v168_v18, %v167_v16  ;;  %v170_v24 = vld [vmem:[#allocation5 + $0x28] sm:$0xff]  ;;  %v187_v25 = vld [vmem:[#allocation5 + $0xb0] sm:$0xff] }
  0x3c   :  { %v478_v22 = vpack.c.bf16 %v186_v20, %v185_v19  ;;  %v169_v23 = vld [vmem:[#allocation5 + $0x20] sm:$0xff]  ;;  %v188_v26 = vld [vmem:[#allocation5 + $0xb8] sm:$0xff]  ;;  %v171_v29 = vld [vmem:[#allocation5 + $0x30] sm:$0xff] }
  0x3d   :  { %473 = vmatpush3.bf16.msra.mxu1 %v472_v13  ;;  %428 = vmatmul.mubr.msk.f32.vlgmr.msra.gmra.mrb[0].mxu0 %vm88_vm0, %v71_v8  ;;  %v480_v27 = vpack.c.bf16 %v170_v24, %v169_v23  ;;  %v482_v28 = vpack.c.bf16 %v188_v26, %v187_v25  ;;  %v172_v30 = vld [vmem:[#allocation5 + $0x38] sm:$0xff]  ;;  %v189_v31 = vld [vmem:[#allocation5 + $0xc0] sm:$0xff]  ;;  %v190_v32 = vld [vmem:[#allocation5 + $0xc8] sm:$0xff] }
  0x3e   :  { %475 = vmatprep.subr.bf16.mxu1 %v474_v17  ;;  %383 = vmatprep.mubr.f32.mxu0 %v625_v0  ;;  %v484_v33 = vpack.c.bf16 %v172_v30, %v171_v29  ;;  %v486_v34 = vpack.c.bf16 %v190_v32, %v189_v31  ;;  %v173_v35 = vld [vmem:[#allocation5 + $0x40] sm:$0xff]  ;;  %v174_v36 = vld [vmem:[#allocation5 + $0x48] sm:$0xff]  ;;  %v191_v37 = vld [vmem:[#allocation5 + $0xd0] sm:$0xff] }
  0x3f   :  { %v192_v38 = vld [vmem:[#allocation5 + $0xd8] sm:$0xff]  ;;  %v488_v39 = vpack.c.bf16 %v174_v36, %v173_v35  ;;  %v175_v41 = vld [vmem:[#allocation5 + $0x50] sm:$0xff]  ;;  %v193_v43 = vld [vmem:[#allocation5 + $0xe0] sm:$0xff] }
  0x40   :  { %v490_v40 = vpack.c.bf16 %v192_v38, %v191_v37  ;;  %v176_v42 = vld [vmem:[#allocation5 + $0x58] sm:$0xff]  ;;  %v194_v44 = vld [vmem:[#allocation5 + $0xe8] sm:$0xff]  ;;  %v177_v47 = vld [vmem:[#allocation5 + $0x60] sm:$0xff] }
  0x41   :  { %477 = vmatpush3.bf16.msra.mxu1 %v476_v21  ;;  %v492_v45 = vpack.c.bf16 %v176_v42, %v175_v41  ;;  %v494_v46 = vpack.c.bf16 %v194_v44, %v193_v43  ;;  %v178_v48 = vld [vmem:[#allocation5 + $0x68] sm:$0xff]  ;;  %v195_v50 = vld [vmem:[#allocation5 + $0xf0] sm:$0xff]  ;;  %v196_v51 = vld [vmem:[#allocation5 + $0xf8] sm:$0xff] }
  0x42   :  { %479 = vmatprep.subr.bf16.mxu1 %v478_v22  ;;  %v496_v49 = vpack.c.bf16 %v178_v48, %v177_v47  ;;  %v498_v52 = vpack.c.bf16 %v196_v51, %v195_v50  ;;  %v179_v53 = vld [vmem:[#allocation5 + $0x70] sm:$0xff]  ;;  %v180_v54 = vld [vmem:[#allocation5 + $0x78] sm:$0xff]  ;;  %v276_v56 = vld [vmem:[#allocation7 + $0x8] sm:$0xff] }
  0x43   :  { %v500_v55 = vpack.c.bf16 %v180_v54, %v179_v53  ;;  %v278_v57 = vld [vmem:[#allocation7 + $0x18] sm:$0xff]  ;;  %v275_v58 = vld [vmem:[#allocation7] sm:$0xff]  ;;  %v277_v60 = vld [vmem:[#allocation7 + $0x10] sm:$0xff] }
  0x44   :  { %v502_v59 = vpack.c.bf16 %v278_v57, %v276_v56  ;;  %v280_v61 = vld [vmem:[#allocation7 + $0x28] sm:$0xff]  ;;  %v282_v62 = vld [vmem:[#allocation7 + $0x38] sm:$0xff]  ;;  %v504_v63 = vpack.c.bf16 %v277_v60, %v275_v58  ;;  %v279_v1 = vld [vmem:[#allocation7 + $0x20] sm:$0xff] }
  0x45   :  { %481 = vmatpush3.bf16.msra.mxu1 %v480_v27  ;;  %v506_v0 = vpack.c.bf16 %v282_v62, %v280_v61  ;;  %v281_v2 = vld [vmem:[#allocation7 + $0x30] sm:$0xff]  ;;  %v284_v3 = vld [vmem:[#allocation7 + $0x48] sm:$0xff]  ;;  %v286_v4 = vld [vmem:[#allocation7 + $0x58] sm:$0xff] }
  0x46   :  { %483 = vmatprep.subr.bf16.mxu1 %v482_v28  ;;  %503 = vmatprep.subr.bf16.mxu0 %v502_v59  ;;  %v508_v5 = vpack.c.bf16 %v281_v2, %v279_v1  ;;  %v510_v6 = vpack.c.bf16 %v286_v4, %v284_v3  ;;  %v283_v7 = vld [vmem:[#allocation7 + $0x40] sm:$0xff]  ;;  %v285_v8 = vld [vmem:[#allocation7 + $0x50] sm:$0xff]  ;;  %v288_v9 = vld [vmem:[#allocation7 + $0x68] sm:$0xff]  ;;  %v78_v28 = vlaneseq  ;;  %v395_v4 = vstv %s733_s0 }
  0x47   :  { %505 = vmatpush1.bf16.msra.mxu0 %v504_v63  ;;  %v290_v10 = vld [vmem:[#allocation7 + $0x78] sm:$0xff]  ;;  %v512_v11 = vpack.c.bf16 %v285_v8, %v283_v7  ;;  %v287_v13 = vld [vmem:[#allocation7 + $0x60] sm:$0xff]  ;;  %v289_v14 = vld [vmem:[#allocation7 + $0x70] sm:$0xff] }
  0x48   :  { %507 = vmatprep.subr.bf16.mxu0 %v506_v0  ;;  %v514_v12 = vpack.c.bf16 %v290_v10, %v288_v9  ;;  %v292_v15 = vld [vmem:[#allocation7 + $0x88] sm:$0xff]  ;;  %v294_v16 = vld [vmem:[#allocation7 + $0x98] sm:$0xff]  ;;  %v516_v17 = vpack.c.bf16 %v289_v14, %v287_v13  ;;  %v291_v19 = vld [vmem:[#allocation7 + $0x80] sm:$0xff]  ;;  %v79_v29 = vshrl.u32 %v78_v28, 7  ;;  %v401_v13 = vstv %s400_s30 }
  0x49   :  { %485 = vmatpush3.bf16.msra.mxu1 %v484_v33  ;;  %v518_v18 = vpack.c.bf16 %v294_v16, %v292_v15  ;;  %v293_v20 = vld [vmem:[#allocation7 + $0x90] sm:$0xff]  ;;  %v296_v21 = vld [vmem:[#allocation7 + $0xa8] sm:$0xff]  ;;  %v298_v22 = vld [vmem:[#allocation7 + $0xb8] sm:$0xff]  ;;  %v411_v15 = vand.u32 127, %v78_v28 }
  0x4a   :  { %487 = vmatprep.subr.bf16.mxu1 %v486_v34  ;;  %v520_v23 = vpack.c.bf16 %v293_v20, %v291_v19  ;;  %v522_v24 = vpack.c.bf16 %v298_v22, %v296_v21  ;;  %v295_v25 = vld [vmem:[#allocation7 + $0xa0] sm:$0xff]  ;;  %v297_v26 = vld [vmem:[#allocation7 + $0xb0] sm:$0xff]  ;;  %v80_v30 = vsub.s32 0, %v79_v29  ;;  %v84_v32 = vsub.s32 1, %v79_v29  ;;  %v300_v41 = vld [vmem:[#allocation7 + $0xc8] sm:$0xff] }
  0x4b   :  { %509 = vmatpush1.bf16.msra.mxu0 %v508_v5  ;;  %v524_v27 = vpack.c.bf16 %v297_v26, %v295_v25  ;;  %v76_v31 = vld [vmem:[%s736_s3] sm:$0x3]  ;;  %v302_v42 = vld [vmem:[#allocation7 + $0xd8] sm:$0xff]  ;;  %v304_v47 = vld [vmem:[#allocation7 + $0xe8] sm:$0xff]  ;;  %vm412_vm1 = vcmp.lt.s32.totalorder %v411_v15, 8  ;;  %vm418_vm3 = vcmp.eq.s32.totalorder %v411_v15, 8 }
  0x4c   :  { %511 = vmatprep.subr.bf16.mxu0 %v510_v6  ;;  %v81_v33 = vrot.slane %v76_v31, %v80_v30  ;;  %v85_v34 = vrot.slane %v76_v31, %v84_v32  ;;  %v526_v43 = vpack.c.bf16 %v302_v42, %v300_v41  ;;  %v299_v44 = vld [vmem:[#allocation7 + $0xc0] sm:$0xff]  ;;  %v306_v48 = vld [vmem:[#allocation7 + $0xf8] sm:$0xff]  ;;  %v305_v51 = vld [vmem:[#allocation7 + $0xf0] sm:$0xff] }
  0x4d   :  { %489 = vmatpush3.bf16.msra.mxu1 %v488_v39  ;;  %v303_v50 = vld [vmem:[#allocation7 + $0xe0] sm:$0xff] }
  0x4e   :  { %491 = vmatprep.subr.bf16.mxu1 %v490_v40  ;;  %v429_v54 = vld [vmem:[%s738_s5] ss:$0 sm:$0xff] }
  0x4f   :  { %513 = vmatpush1.bf16.msra.mxu0 %v512_v11  ;;  %v307_v59 = vld [vmem:[%s740_s7] sm:$0x3] }
  0x50   :  { %515 = vmatprep.subr.bf16.mxu0 %v514_v12  ;;  %v316_v60 = vrot.slane %v307_v59, %v84_v32  ;;  %v312_v3 = vrot.slane %v307_v59, %v80_v30 }
  0x51   :  { %493 = vmatpush3.bf16.msra.mxu1 %v492_v45  ;;  %v301_v45 = vld [vmem:[#allocation7 + $0xd0] sm:$0xff] }
  0x52   :  { %495 = vmatprep.subr.bf16.mxu1 %v494_v46  ;;  %v528_v46 = vpack.c.bf16 %v301_v45, %v299_v44 }
  0x53   :  { %517 = vmatpush1.bf16.msra.mxu0 %v516_v17 }
  0x54   :  { %519 = vmatprep.subr.bf16.mxu0 %v518_v18 }
  0x55   :  { %497 = vmatpush3.bf16.msra.mxu1 %v496_v49  ;;  %v530_v49 = vpack.c.bf16 %v306_v48, %v304_v47 }
  0x56   :  { %499 = vmatprep.subr.bf16.mxu1 %v498_v52  ;;  %v532_v52 = vpack.c.bf16 %v305_v51, %v303_v50 }
  0x57   :  { %521 = vmatpush1.bf16.msra.mxu0 %v520_v23 }
  0x58   :  { %523 = vmatprep.subr.bf16.mxu0 %v522_v24 }
  0x59   :  { %501 = vmatpush3.bf16.msra.mxu1 %v500_v55 }
  0x5b   :  { %525 = vmatpush1.bf16.msra.mxu0 %v524_v27 }
  0x5c   :  { %527 = vmatprep.subr.bf16.mxu0 %v526_v43 }
  0x5f   :  { %529 = vmatpush1.bf16.msra.mxu0 %v528_v46 }
  0x60   :  { %531 = vmatprep.subr.bf16.mxu0 %v530_v49 }
  0x63   :  { %533 = vmatpush1.bf16.msra.mxu0 %v532_v52 }
 0x110   :  { %v158_v35 = vpop.f32.mrb[0].mxu0 }
 0x111   :  { %v159_v36 = vadd.f32 %v158_v35, %v81_v33  ;;  %v160_v37 = vpop.f32.mrb[1].mxu0 }
 0x112   :  { %v161_v38 = vadd.f32 %v160_v37, %v85_v34 }
 0x113   :  { %v163_v40 = vmax.f32 %v159_v36, 0.0 }
 0x114   :  { %v164_v39 = vmax.f32 %v161_v38, 0.0 }
 0x116   :  { %268 = vmatprep.mubr.f32.mxu1 %v164_v39 }
 0x117   :  { %269 = vmatmul.mubr.f32.vlgmr.msra.gmra.mrb[0].mxu1 %v163_v40 }
 0x1ea   :  { %v463_v53 = vpop.f32.mrb[0].mxu1 }
 0x1eb   :  { %v464_v55 = vpop.f32.mrb[1].mxu1 }
 0x1ec   :  { %v465_v56 = vadd.f32 %v464_v55, %v463_v53 }
 0x1ee   :  { %v271_v57 = vadd.f32 %v465_v56, %v429_v54 }
 0x1f0   :  { %v274_v58 = vmax.f32 %v271_v57, 0.0 }
 0x1f2   :  { %384 = vmatmul.mubr.f32.vlgmr.msra.gmra.mrb[2].mxu0 %v274_v58 }
 0x2c5   :  { %v385_v61 = vpop.f32.mrb[2].mxu0 }
 0x2c6   :  { %v387_v62 = vpop.f32.mrb[3].mxu0  ;;  %v386_v6 = vadd.f32 %v385_v61, %v312_v3 }
 0x2c7   :  { %v388_v63 = vadd.f32 %v387_v62, %v316_v60 }
 0x2c9   :  { %v390_v0 = vmax.f32 %v388_v63, -20.0 }
 0x2cb   :  { %v391_v1 = vmin.f32 %v390_v0, 2.0 }
 0x2cd   :  { %v392_v2 = vmul.f32 1.442695, %v391_v1  ;;  %v402_v14 = vsub.f32 %v401_v13, %v391_v1 }
 0x2cf   :  { %542 = vpow2.f32 %v392_v2  ;;  %v430_v17 = vadd.f32 -0.9189385, %v402_v14 }
 0x2d9   :  { %v543_v5 = vpop.eup %542 }
 0x2da   :  { %v396_v7 = vmul.f32 %v543_v5, %v395_v4 }
 0x2dc   :  { %v397_v8 = vadd.f32 %v396_v7, %v386_v6 }
 0x2de   :  { %544 = vtanh.f32 %v397_v8 }
 0x2e8   :  { %v545_v9 = vpop.eup %544 }
 0x2e9   :  { %v404_v10 = vmul.f32 %v545_v9, %v545_v9 }
 0x2eb   :  { %v405_v11 = vsub.f32 1.0, %v404_v10 }
 0x2ed   :  { %v406_v12 = vadd.f32 1e-06, %v405_v11 }
 0x2ef   :  { %546 = vlog2.f32 %v406_v12 }
 0x2f9   :  { %v547_v16 = vpop.eup %546 }
 0x2fa   :  { %v408_v18 = vmul.f32 0.6931472, %v547_v16 }
 0x2fc   :  { %v409_v19 = vsub.f32 %v430_v17, %v408_v18 }
 0x2fe   :  { %v413_v20 = vsel %vm412_vm1, %v409_v19, 0.0 }
 0x2ff   :  { %v415_v21 = vsel %vm414_vm2, %v413_v20, 0.0 }
 0x300   :  { %416 = vadd.xlane.f32.xlu0 %v415_v21 }
 0x38d   :  { %v417_v22 = vpop.xlane.xlu0 %416 }
 0x38e   :  { %v419_v23 = vsel %vm418_vm3, %v417_v22, 0.0 }
 0x38f   :  { %v420_v24 = vsel %vm412_vm1, %v545_v9, %v419_v23 }
 0x390   :  { %421 = vst [vmem:[%s741_s8] sm:$0xf] %v420_v24 }
 0x391   :  { %426 = vsyncpa [#allocation4], 1 }
 0x392   :  { %427 = vsyncpa [#allocation6], 1 }

</bundles_post_ra>
